<compile_context>
chip_gen: v5e
topology: v5e:2x2
jax: 0.10.0
libtpu: 0.0.40
codegen_flags: <defaults>
</compile_context>

<pallas_src>
import functools

import jax
import jax.numpy as jnp
from jax.experimental import pallas as pl
from jax.experimental.pallas import tpu as pltpu

LN_EPS = 1e-5


def _round_up(x, m):
    return ((x + m - 1) // m) * m


# ------------------------- Pallas kernel -------------------------

def _merge_kernel(x_ref, g_ref, b_ref, w_ref, o_ref):
    # x_ref: (tm, 4C) bf16   g_ref/b_ref: (1, 4C) f32
    # w_ref: (4C, Np) bf16   o_ref: (tm, Np) f32
    x = x_ref[...].astype(jnp.float32)                      # LN statistics in f32
    mu = jnp.mean(x, axis=-1, keepdims=True)
    xc = x - mu
    var = jnp.mean(xc * xc, axis=-1, keepdims=True)
    xn = xc * jax.lax.rsqrt(var + LN_EPS) * g_ref[...] + b_ref[...]
    # bf16 operands on the MXU, f32 accumulation.
    o_ref[...] = jnp.dot(xn.astype(jnp.bfloat16), w_ref[...],
                         preferred_element_type=jnp.float32)


# ------------------------- pallas_call wrapper -------------------------

def _vmem_need(tm, K, Np):
    # double-buffered bf16 input tile + f32 output tile + bf16 weight + gamma/beta
    return 2 * (tm * K * 2) + 2 * (tm * Np * 4) + 2 * (K * Np * 2) + 2 * 2 * (K * 4)


def _choose_tm(M, K, Np):
    """Largest of {512, 256, 128} rows whose working set fits ~40 MiB (v7x-safe)."""
    budget = 40 * 1024 * 1024
    for tm in (512, 256, 128):
        if tm <= M and _vmem_need(tm, K, Np) <= budget:
            return tm
    return min(_round_up(max(M, 1), 16), 128)


def _norm_reduce(xcat, gamma, beta, w_t, tm):
    M, K = xcat.shape
    Np = w_t.shape[1]
    assert M % tm == 0
    vmem_limit = int(max(32 * 1024 * 1024,
                         min(48 * 1024 * 1024, _vmem_need(tm, K, Np) + (4 << 20))))
    return pl.pallas_call(
        _merge_kernel,
        out_shape=jax.ShapeDtypeStruct((M, Np), jnp.float32),
        grid_spec=pltpu.PrefetchScalarGridSpec(
            num_scalar_prefetch=0,
            grid=(M // tm,),
            in_specs=[
                pl.BlockSpec((tm, K), lambda i: (i, 0)),    # token tile (pipelined)
                pl.BlockSpec((1, K), lambda i: (0, 0)),     # gamma (resident)
                pl.BlockSpec((1, K), lambda i: (0, 0)),     # beta  (resident)
                pl.BlockSpec((K, Np), lambda i: (0, 0)),    # reduction weight (resident)
            ],
            out_specs=pl.BlockSpec((tm, Np), lambda i: (i, 0)),
        ),
        compiler_params=pltpu.CompilerParams(
            dimension_semantics=("parallel",),
            vmem_limit_bytes=vmem_limit,
        ),
    )(xcat, gamma, beta, w_t)


# ------------------------- one-time parameter prep (hoisted) -------------------------

def prepare_params(params):
    out_dim, K = params["red_w"].shape                      # (2C, 4C)
    Np = 128 if out_dim < 128 else out_dim                  # pad lanes only if 2C < 128
    w_t = params["red_w"].T.astype(jnp.bfloat16)            # (4C, 2C) bf16 for the MXU
    if Np != out_dim:
        w_t = jnp.pad(w_t, ((0, 0), (0, Np - out_dim)))
    return {
        "w_t": w_t,                                          # (4C, Np) bf16
        "gamma": params["norm_g"].reshape(1, K).astype(jnp.float32),
        "beta": params["norm_b"].reshape(1, K).astype(jnp.float32),
    }


# ------------------------- PatchMerging forward (jitted) -------------------------

@functools.partial(jax.jit, static_argnums=(1, 2))
def patch_merging_forward(x, H, W, prep):
    """x: (B, H*W, C) -> (B, ceil(H/2)*ceil(W/2), 2C) float32."""
    B, L, C = x.shape
    assert L == H * W, "input feature has wrong size"
    x4 = x.reshape(B, H, W, C)

    # F.pad(x, (0, 0, 0, W % 2, 0, H % 2)): pad right / bottom only.
    Hp, Wp = H + (H % 2), W + (W % 2)
    if (Hp, Wp) != (H, W):
        x4 = jnp.pad(x4, ((0, 0), (0, Hp - H), (0, Wp - W), (0, 0)))

    # 2x2 neighborhood gather + channel concat.  Pure data movement; under jit
    # this (plus the row pad and bf16 cast below) fuses into one XLA copy.
    x0 = x4[:, 0::2, 0::2, :]
    x1 = x4[:, 1::2, 0::2, :]
    x2 = x4[:, 0::2, 1::2, :]
    x3 = x4[:, 1::2, 1::2, :]
    xcat = jnp.concatenate([x0, x1, x2, x3], axis=-1)       # (B, Hp/2, Wp/2, 4C)

    H2, W2 = Hp // 2, Wp // 2
    M, K = B * H2 * W2, 4 * C
    xcat = xcat.reshape(M, K).astype(jnp.bfloat16)          # bf16 HBM activations

    Np = prep["w_t"].shape[1]
    tm = _choose_tm(M, K, Np)
    Mp = _round_up(M, tm)
    if Mp != M:
        # Zero rows: LayerNorm(0) -> beta, matmul -> beta @ W; cropped below.
        xcat = jnp.pad(xcat, ((0, Mp - M), (0, 0)))

    out = _norm_reduce(xcat, prep["gamma"], prep["beta"], prep["w_t"], tm)  # (Mp, Np)

    twoC = 2 * C
    return out[:M, :twoC].reshape(B, H2 * W2, twoC)


# ------------------------- pure-jnp reference (f32) -------------------------

def reference_forward(x, H, W, params):
    B, L, C = x.shape
    x4 = x.reshape(B, H, W, C)
    Hp, Wp = H + (H % 2), W + (W % 2)
    if (Hp, Wp) != (H, W):
        x4 = jnp.pad(x4, ((0, 0), (0, Hp - H), (0, Wp - W), (0, 0)))
    x0 = x4[:, 0::2, 0::2, :]
    x1 = x4[:, 1::2, 0::2, :]
    x2 = x4[:, 0::2, 1::2, :]
    x3 = x4[:, 1::2, 1::2, :]
    xc = jnp.concatenate([x0, x1, x2, x3], axis=-1).reshape(B, -1, 4 * C)
    mu = xc.mean(-1, keepdims=True)
    var = ((xc - mu) ** 2).mean(-1, keepdims=True)
    xn = (xc - mu) / jnp.sqrt(var + LN_EPS) * params["norm_g"] + params["norm_b"]
    return jnp.einsum("bnk,ok->bno", xn, params["red_w"])


# ------------------------- parameter init -------------------------

def init_params(key, dim):
    k1, k2, k3 = jax.random.split(key, 3)
    return {
        "norm_g": 1.0 + 0.1 * jax.random.normal(k1, (4 * dim,), dtype=jnp.float32),
        "norm_b": 0.1 * jax.random.normal(k2, (4 * dim,), dtype=jnp.float32),
        "red_w": 0.05 * jax.random.normal(k3, (2 * dim, 4 * dim), dtype=jnp.float32),
    }


if __name__ == "__main__":
    key = jax.random.PRNGKey(0)
    k_x, k_x2, k_p = jax.random.split(key, 3)

    dim = 32
    params = init_params(k_p, dim)
    prep = prepare_params(params)          # one-time weight/gamma/beta prep (hoisted)

    # Case 1: even H, W.
    B, H, W = 2, 16, 16
    x = jax.random.normal(k_x, (B, H * W, dim), dtype=jnp.float32)
    out = jax.block_until_ready(patch_merging_forward(x, H, W, prep))
    ref = reference_forward(x, H, W, params)
    assert out.shape == (B, (H // 2) * (W // 2), 2 * dim)
    err = float(jnp.max(jnp.abs(out - ref)))
    assert jnp.allclose(out, ref, atol=2.5e-2, rtol=2.5e-2), err

    # Case 2: odd H / W exercises the spatial-pad path and the ragged-M path.
    B2, H2, W2 = 1, 7, 9
    x2 = jax.random.normal(k_x2, (B2, H2 * W2, dim), dtype=jnp.float32)
    out2 = jax.block_until_ready(patch_merging_forward(x2, H2, W2, prep))
    ref2 = reference_forward(x2, H2, W2, params)
    assert out2.shape == (B2, ((H2 + 1) // 2) * ((W2 + 1) // 2), 2 * dim)
    err2 = float(jnp.max(jnp.abs(out2 - ref2)))
    assert jnp.allclose(out2, ref2, atol=2.5e-2, rtol=2.5e-2), err2

    print("KERNEL_OK")
</pallas_src>

<mosaic_0001>
module attributes {stable_mosaic.version = 11 : i64} {
  func.func @_merge_kernel(%arg0: i32, %arg1: memref<128x128xbf16, #tpu.memory_space<vmem>>, %arg2: memref<1x128xf32, #tpu.memory_space<vmem>>, %arg3: memref<1x128xf32, #tpu.memory_space<vmem>>, %arg4: memref<128x128xbf16, #tpu.memory_space<vmem>>, %arg5: memref<128x128xf32, #tpu.memory_space<vmem>>) attributes {dimension_semantics = [#tpu.dimension_semantics<parallel>], iteration_bounds = array<i64: 1>, scalar_prefetch = 0 : i64, scratch_operands = 0 : i64, tpu.core_type = #tpu.core_type<tc>, window_params = [{transform_indices = @transform_0, window_bounds = array<i64: 128, 128>}, {pipeline_mode = #tpu.pipeline_mode<synchronous>, transform_indices = @transform_1, window_bounds = array<i64: 1, 128>}, {pipeline_mode = #tpu.pipeline_mode<synchronous>, transform_indices = @transform_2, window_bounds = array<i64: 1, 128>}, {pipeline_mode = #tpu.pipeline_mode<synchronous>, transform_indices = @transform_3, window_bounds = array<i64: 128, 128>}, {transform_indices = @transform_4, window_bounds = array<i64: 128, 128>}]} {
    %c0 = arith.constant 0 : index
    %c0_0 = arith.constant 0 : index
    %0 = vector.load %arg1[%c0, %c0_0] : memref<128x128xbf16, #tpu.memory_space<vmem>>, vector<128x128xbf16>
    %1 = arith.extf %0 : vector<128x128xbf16> to vector<128x128xf32>
    %cst = arith.constant dense<0.000000e+00> : vector<128xf32>
    %2 = vector.multi_reduction <add>, %1, %cst [1] : vector<128x128xf32> to vector<128xf32>
    %3 = vector.shape_cast %2 : vector<128xf32> to vector<128x1xf32>
    %cst_1 = arith.constant 1.280000e+02 : f32
    %4 = vector.broadcast %cst_1 : f32 to vector<128x1xf32>
    %5 = arith.divf %3, %4 : vector<128x1xf32>
    %6 = vector.broadcast %5 : vector<128x1xf32> to vector<128x128xf32>
    %7 = arith.subf %1, %6 : vector<128x128xf32>
    %8 = arith.mulf %7, %7 : vector<128x128xf32>
    %cst_2 = arith.constant dense<0.000000e+00> : vector<128xf32>
    %9 = vector.multi_reduction <add>, %8, %cst_2 [1] : vector<128x128xf32> to vector<128xf32>
    %10 = vector.shape_cast %9 : vector<128xf32> to vector<128x1xf32>
    %cst_3 = arith.constant 1.280000e+02 : f32
    %11 = vector.broadcast %cst_3 : f32 to vector<128x1xf32>
    %12 = arith.divf %10, %11 : vector<128x1xf32>
    %cst_4 = arith.constant 9.99999974E-6 : f32
    %13 = vector.broadcast %cst_4 : f32 to vector<128x1xf32>
    %14 = arith.addf %12, %13 : vector<128x1xf32>
    %15 = math.rsqrt %14 : vector<128x1xf32>
    %16 = vector.broadcast %15 : vector<128x1xf32> to vector<128x128xf32>
    %17 = arith.mulf %7, %16 : vector<128x128xf32>
    %c0_5 = arith.constant 0 : index
    %c0_6 = arith.constant 0 : index
    %18 = vector.load %arg2[%c0_5, %c0_6] : memref<1x128xf32, #tpu.memory_space<vmem>>, vector<1x128xf32>
    %19 = vector.broadcast %18 : vector<1x128xf32> to vector<128x128xf32>
    %20 = arith.mulf %17, %19 : vector<128x128xf32>
    %c0_7 = arith.constant 0 : index
    %c0_8 = arith.constant 0 : index
    %21 = vector.load %arg3[%c0_7, %c0_8] : memref<1x128xf32, #tpu.memory_space<vmem>>, vector<1x128xf32>
    %22 = vector.broadcast %21 : vector<1x128xf32> to vector<128x128xf32>
    %23 = arith.addf %20, %22 : vector<128x128xf32>
    %24 = arith.truncf %23 : vector<128x128xf32> to vector<128x128xbf16>
    %c0_9 = arith.constant 0 : index
    %c0_10 = arith.constant 0 : index
    %25 = vector.load %arg4[%c0_9, %c0_10] : memref<128x128xbf16, #tpu.memory_space<vmem>>, vector<128x128xbf16>
    %cst_11 = arith.constant dense<0.000000e+00> : vector<128x128xf32>
    %26 = tpu.matmul %24, %25, %cst_11 {dimension_numbers = #tpu.dot_dimension_numbers<[1], [0], [0], [1], [0, 0, 1, 1], [], []>} : vector<128x128xbf16>, vector<128x128xbf16>, vector<128x128xf32> -> vector<128x128xf32>
    %c0_12 = arith.constant 0 : index
    %c0_13 = arith.constant 0 : index
    %27 = vector.load %arg5[%c0_12, %c0_13] : memref<128x128xf32, #tpu.memory_space<vmem>>, vector<128x128xf32>
    tpu.vector_store %arg5[%c0_12, %c0_13], %26 {strides = array<i32>} : memref<128x128xf32, #tpu.memory_space<vmem>>, vector<128x128xf32>,
    return
  }
  func.func @transform_0(%arg0: i32) -> (i32, i32) {
    %c0_i32 = arith.constant 0 : i32
    %c0_i32_0 = arith.constant 0 : i32
    return %arg0, %c0_i32 : i32, i32
  }
  func.func @transform_1(%arg0: i32) -> (i32, i32) {
    %c0_i32 = arith.constant 0 : i32
    %c0_i32_0 = arith.constant 0 : i32
    %c0_i32_1 = arith.constant 0 : i32
    return %c0_i32, %c0_i32_0 : i32, i32
  }
  func.func @transform_2(%arg0: i32) -> (i32, i32) {
    %c0_i32 = arith.constant 0 : i32
    %c0_i32_0 = arith.constant 0 : i32
    %c0_i32_1 = arith.constant 0 : i32
    return %c0_i32, %c0_i32_0 : i32, i32
  }
  func.func @transform_3(%arg0: i32) -> (i32, i32) {
    %c0_i32 = arith.constant 0 : i32
    %c0_i32_0 = arith.constant 0 : i32
    %c0_i32_1 = arith.constant 0 : i32
    return %c0_i32, %c0_i32_0 : i32, i32
  }
  func.func @transform_4(%arg0: i32) -> (i32, i32) {
    %c0_i32 = arith.constant 0 : i32
    %c0_i32_0 = arith.constant 0 : i32
    return %arg0, %c0_i32 : i32, i32
  }
}

</mosaic_0001>

<bundles_post_ra>
// kernel: patch_merging_forward.1
= control target key start
LH: loop header
LB: loop body
LE: loop exit
PB: predicated region body
PF: predicated region fallthrough
CT: control target
= control target key end

     0   :  { %s1364_s0 = inlined_call_operand.vmem [shape: bf16[128,128], index: 0, kind: input, shape index: {}]   ;;  %s1365_s1 = inlined_call_operand.vmem [shape: f32[1,128], index: 1, kind: input, shape index: {}]   ;;  %s1366_s2 = inlined_call_operand.vmem [shape: f32[1,128], index: 2, kind: input, shape index: {}]   ;;  %s1367_s3 = inlined_call_operand.vmem [shape: bf16[128,128], index: 3, kind: input, shape index: {}]   ;;  %s1368_s4 = inlined_call_operand.hbm [shape: f32[128,128], index: 4, kind: output, shape index: {}]  }
   0x1   :  { %v773_v0 = vld [vmem:[%s1364_s0 + $0x30] sm:$0xff]   ;;  %v778_v1 = vld [vmem:[%s1364_s0 + $0x20] sm:$0xff]  }
   0x2   :  { %v783_v2 = vld [vmem:[%s1364_s0] sm:$0xff]   ;;  %v638_v3 = vunpack.c.l.bf16 %v773_v0  ;;  %v630_v4 = vunpack.c.l.bf16 %v778_v1 }
   0x3   :  { %v614_v5 = vunpack.c.l.bf16 %v783_v2 }
   0x4   :  { %74 = vadd.xlane.f32.xlu1 %v638_v3  ;;  %66 = vadd.xlane.f32.xlu0 %v630_v4 }
   0x5   :  { %9 = vsyncpa [#allocation3], 0  ;;  %50 = vadd.xlane.f32.xlu2 %v614_v5  ;;  %v639_v6 = vunpack.c.h.bf16 %v773_v0  ;;  %v631_v7 = vunpack.c.h.bf16 %v778_v1  ;;  %v615_v8 = vunpack.c.h.bf16 %v783_v2  ;;  %v796_v9 = vld [vmem:[%s1364_s0 + $0x10] sm:$0xff]   ;;  %v801_v10 = vld [vmem:[%s1364_s0 + $0x28] sm:$0xff]   ;;  %v741_v24 = vmov 128.0   ;;  %s560_s25 = sshll.u32 %s1368_s4, 4  ;;  %s561_s25 = int_to_ptr.hbm [resolvable:$true] %s560_s25 }
   0x6   :  { %v622_v11 = vunpack.c.l.bf16 %v796_v9  ;;  %v623_v12 = vunpack.c.h.bf16 %v796_v9  ;;  %v634_v13 = vunpack.c.l.bf16 %v801_v10  ;;  %v815_v14 = vld [vmem:[%s1364_s0 + $0x38] sm:$0xff]   ;;  %v635_v15 = vunpack.c.h.bf16 %v801_v10  ;;  %v829_v18 = vld [vmem:[%s1364_s0 + $0x8] sm:$0xff]   ;;  %s743_s26 = smov 128   ;;  %s744_s27 = smov 8  }
   0x7   :  { %v642_v16 = vunpack.c.l.bf16 %v815_v14  ;;  %v643_v17 = vunpack.c.h.bf16 %v815_v14  ;;  %v834_v19 = vld [vmem:[%s1364_s0 + $0x18] sm:$0xff]   ;;  %v618_v20 = vunpack.c.l.bf16 %v829_v18  ;;  %v619_v21 = vunpack.c.h.bf16 %v829_v18 }
   0x8   :  { %v626_v22 = vunpack.c.l.bf16 %v834_v19  ;;  %v627_v23 = vunpack.c.h.bf16 %v834_v19  ;;  %681 = vrcp.f32 %v741_v24  ;;  %v611_v18 = vld [vmem:[%s1367_s3 + $0x38] sm:$0xff]  ;;  %v610_v19 = vld [vmem:[%s1367_s3 + $0x30] sm:$0xff] }
   0x9   :  { %652 = vmatpush.bf16.msra.mxu2 %v611_v18  ;;  %653 = vmatpush.bf16.msra.mxu3 %v611_v18 }
   0xa   :  { %489 = vmatpush.bf16.msra.mxu0 %v611_v18  ;;  %651 = vmatpush.bf16.msra.mxu1 %v611_v18 }
   0xc   :  { %76 = vadd.xlane.f32.xlu1 %v639_v6  ;;  %68 = vadd.xlane.f32.xlu0 %v631_v7 }
   0xd   :  { %52 = vadd.xlane.f32.xlu2 %v615_v8  ;;  %655 = vmatpush.bf16.msra.mxu2 %v610_v19 }
   0xe   :  { %v682_v25 = vpop.eup %681  ;;  %656 = vmatpush.bf16.msra.mxu3 %v610_v19  ;;  %490 = vmatpush.bf16.msra.mxu0 %v610_v19 }
   0xf   :  { %v83_v26 = vmul.f32 128.0, %v682_v25  ;;  %vm87_vm0 = vweird.f32 %v682_v25  ;;  %654 = vmatpush.bf16.msra.mxu1 %v610_v19 }
  0x11   :  { %v84_v27 = vsub.f32 1.0, %v83_v26 }
  0x13   :  { %v85_v28 = vmul.f32 %v682_v25, %v84_v27 }
  0x14   :  { %58 = vadd.xlane.f32.xlu0 %v622_v11  ;;  %60 = vadd.xlane.f32.xlu1 %v623_v12 }
  0x15   :  { %70 = vadd.xlane.f32.xlu2 %v634_v13  ;;  %v86_v29 = vadd.f32 %v682_v25, %v85_v28 }
  0x17   :  { %v848_v30 = vsel %vm87_vm0, %v682_v25, %v86_v29 }
  0x1c   :  { %72 = vadd.xlane.f32.xlu0 %v635_v15  ;;  %78 = vadd.xlane.f32.xlu1 %v642_v16 }
  0x1d   :  { %80 = vadd.xlane.f32.xlu2 %v643_v17 }
  0x24   :  { %54 = vadd.xlane.f32.xlu0 %v618_v20  ;;  %56 = vadd.xlane.f32.xlu1 %v619_v21 }
  0x25   :  { %62 = vadd.xlane.f32.xlu2 %v626_v22 }
  0x2c   :  { %64 = vadd.xlane.f32.xlu0 %v627_v23 }
  0x77   :  { %v75_v31 = vpop.xlane.xlu1 %74  ;;  %v67_v32 = vpop.xlane.xlu0 %66 }
  0x78   :  { %v101_v33 = vmul.f32 %v848_v30, %v75_v31  ;;  %v97_v34 = vmul.f32 %v848_v30, %v67_v32  ;;  %v51_v35 = vpop.xlane.xlu2 %50 }
  0x79   :  { %v89_v49 = vmul.f32 %v848_v30, %v51_v35 }
  0x7a   :  { %v852_v36 = vsub.f32 %v638_v3, %v101_v33  ;;  %v854_v37 = vsub.f32 %v630_v4, %v97_v34 }
  0x7b   :  { %v878_v55 = vsub.f32 %v614_v5, %v89_v49 }
  0x7c   :  { %v129_v38 = vmul.f32 %v854_v37, %v854_v37  ;;  %v133_v39 = vmul.f32 %v852_v36, %v852_v36 }
  0x7d   :  { %v121_v63 = vmul.f32 %v878_v55, %v878_v55 }
  0x7e   :  { %153 = vadd.xlane.f32.xlu1 %v129_v38  ;;  %161 = vadd.xlane.f32.xlu0 %v133_v39  ;;  %v607_v38 = vld [vmem:[%s1367_s3 + $0x18] sm:$0xff]  ;;  %v606_v39 = vld [vmem:[%s1367_s3 + $0x10] sm:$0xff] }
  0x7f   :  { %v77_v40 = vpop.xlane.xlu1 %76  ;;  %v69_v41 = vpop.xlane.xlu0 %68 }
  0x80   :  { %v102_v42 = vmul.f32 %v848_v30, %v77_v40  ;;  %v98_v43 = vmul.f32 %v848_v30, %v69_v41  ;;  %v53_v44 = vpop.xlane.xlu2 %52 }
  0x81   :  { %v90_v45 = vmul.f32 %v848_v30, %v53_v44  ;;  %v605_v44 = vld [vmem:[%s1367_s3 + $0x8] sm:$0xff] }
  0x82   :  { %v863_v46 = vsub.f32 %v639_v6, %v102_v42  ;;  %v865_v47 = vsub.f32 %v631_v7, %v98_v43 }
  0x83   :  { %v867_v48 = vsub.f32 %v615_v8, %v90_v45 }
  0x84   :  { %v134_v50 = vmul.f32 %v863_v46, %v863_v46  ;;  %v130_v51 = vmul.f32 %v865_v47, %v865_v47 }
  0x85   :  { %v122_v52 = vmul.f32 %v867_v48, %v867_v48 }
  0x86   :  { %163 = vadd.xlane.f32.xlu1 %v134_v50  ;;  %155 = vadd.xlane.f32.xlu2 %v130_v51  ;;  %v604_v50 = vld [vmem:[%s1367_s3] sm:$0xff] }
  0x87   :  { %139 = vadd.xlane.f32.xlu0 %v122_v52  ;;  %v59_v53 = vpop.xlane.xlu0 %58  ;;  %v61_v54 = vpop.xlane.xlu1 %60 }
  0x88   :  { %v93_v56 = vmul.f32 %v848_v30, %v59_v53  ;;  %v71_v57 = vpop.xlane.xlu2 %70  ;;  %v94_v60 = vmul.f32 %v848_v30, %v61_v54 }
  0x89   :  { %v99_v58 = vmul.f32 %v848_v30, %v71_v57 }
  0x8a   :  { %v884_v59 = vsub.f32 %v622_v11, %v93_v56  ;;  %v899_v1 = vsub.f32 %v623_v12, %v94_v60 }
  0x8b   :  { %v889_v61 = vsub.f32 %v634_v13, %v99_v58 }
  0x8c   :  { %v125_v62 = vmul.f32 %v884_v59, %v884_v59  ;;  %v126_v8 = vmul.f32 %v899_v1, %v899_v1 }
  0x8d   :  { %v131_v0 = vmul.f32 %v889_v61, %v889_v61 }
  0x8e   :  { %145 = vadd.xlane.f32.xlu1 %v125_v62  ;;  %137 = vadd.xlane.f32.xlu2 %v121_v63 }
  0x8f   :  { %157 = vadd.xlane.f32.xlu0 %v131_v0  ;;  %v73_v2 = vpop.xlane.xlu0 %72  ;;  %v79_v3 = vpop.xlane.xlu1 %78 }
  0x90   :  { %v100_v4 = vmul.f32 %v848_v30, %v73_v2  ;;  %v81_v5 = vpop.xlane.xlu2 %80  ;;  %v103_v11 = vmul.f32 %v848_v30, %v79_v3 }
  0x91   :  { %v104_v6 = vmul.f32 %v848_v30, %v81_v5 }
  0x92   :  { %v905_v7 = vsub.f32 %v635_v15, %v100_v4  ;;  %v920_v10 = vsub.f32 %v642_v16, %v103_v11 }
  0x93   :  { %v912_v9 = vsub.f32 %v643_v17, %v104_v6 }
  0x94   :  { %v132_v12 = vmul.f32 %v905_v7, %v905_v7  ;;  %v135_v28 = vmul.f32 %v920_v10, %v920_v10 }
  0x95   :  { %v136_v13 = vmul.f32 %v912_v9, %v912_v9 }
  0x96   :  { %159 = vadd.xlane.f32.xlu1 %v132_v12  ;;  %147 = vadd.xlane.f32.xlu2 %v126_v8 }
  0x97   :  { %167 = vadd.xlane.f32.xlu0 %v136_v13  ;;  %v55_v15 = vpop.xlane.xlu0 %54  ;;  %v57_v24 = vpop.xlane.xlu1 %56 }
  0x98   :  { %v91_v25 = vmul.f32 %v848_v30, %v55_v15  ;;  %v63_v26 = vpop.xlane.xlu2 %62  ;;  %v92_v29 = vmul.f32 %v848_v30, %v57_v24 }
  0x99   :  { %v95_v17 = vmul.f32 %v848_v30, %v63_v26 }
  0x9a   :  { %v926_v27 = vsub.f32 %v618_v20, %v91_v25  ;;  %v941_v20 = vsub.f32 %v619_v21, %v92_v29  ;;  %v609_v21 = vld [vmem:[%s1367_s3 + $0x28] sm:$0xff] }
  0x9b   :  { %v933_v14 = vsub.f32 %v626_v22, %v95_v17  ;;  %658 = vmatpush.bf16.msra.mxu2 %v609_v21  ;;  %659 = vmatpush.bf16.msra.mxu3 %v609_v21 }
  0x9c   :  { %v123_v16 = vmul.f32 %v926_v27, %v926_v27  ;;  %v124_v34 = vmul.f32 %v941_v20, %v941_v20  ;;  %491 = vmatpush.bf16.msra.mxu0 %v609_v21  ;;  %657 = vmatpush.bf16.msra.mxu1 %v609_v21 }
  0x9d   :  { %v127_v31 = vmul.f32 %v933_v14, %v933_v14 }
  0x9e   :  { %141 = vadd.xlane.f32.xlu1 %v123_v16  ;;  %165 = vadd.xlane.f32.xlu2 %v135_v28 }
  0x9f   :  { %149 = vadd.xlane.f32.xlu0 %v127_v31  ;;  %v65_v32 = vpop.xlane.xlu0 %64 }
  0xa0   :  { %v96_v33 = vmul.f32 %v848_v30, %v65_v32 }
  0xa2   :  { %v946_v22 = vsub.f32 %v627_v23, %v96_v33  ;;  %v608_v23 = vld [vmem:[%s1367_s3 + $0x20] sm:$0xff] }
  0xa3   :  { %661 = vmatpush.bf16.msra.mxu2 %v608_v23  ;;  %662 = vmatpush.bf16.msra.mxu3 %v608_v23 }
  0xa4   :  { %v128_v35 = vmul.f32 %v946_v22, %v946_v22  ;;  %492 = vmatpush.bf16.msra.mxu0 %v608_v23  ;;  %660 = vmatpush.bf16.msra.mxu1 %v608_v23 }
  0xa6   :  { %151 = vadd.xlane.f32.xlu1 %v128_v35  ;;  %143 = vadd.xlane.f32.xlu2 %v124_v34 }
  0xa7   :  { %664 = vmatpush.bf16.msra.mxu2 %v607_v38  ;;  %665 = vmatpush.bf16.msra.mxu3 %v607_v38 }
  0xa8   :  { %493 = vmatpush.bf16.msra.mxu0 %v607_v38  ;;  %663 = vmatpush.bf16.msra.mxu1 %v607_v38 }
  0xab   :  { %667 = vmatpush.bf16.msra.mxu2 %v606_v39  ;;  %668 = vmatpush.bf16.msra.mxu3 %v606_v39 }
  0xac   :  { %494 = vmatpush.bf16.msra.mxu0 %v606_v39  ;;  %666 = vmatpush.bf16.msra.mxu1 %v606_v39 }
  0xaf   :  { %670 = vmatpush.bf16.msra.mxu2 %v605_v44  ;;  %671 = vmatpush.bf16.msra.mxu3 %v605_v44 }
  0xb0   :  { %495 = vmatpush.bf16.msra.mxu0 %v605_v44  ;;  %669 = vmatpush.bf16.msra.mxu1 %v605_v44 }
  0xb3   :  { %673 = vmatpush.bf16.msra.mxu2 %v604_v50  ;;  %674 = vmatpush.bf16.msra.mxu3 %v604_v50 }
  0xb4   :  { %496 = vmatpush.bf16.msra.mxu0 %v604_v50  ;;  %672 = vmatpush.bf16.msra.mxu1 %v604_v50 }
  0xf1   :  { %v154_v40 = vpop.xlane.xlu1 %153  ;;  %v162_v41 = vpop.xlane.xlu0 %161 }
  0xf2   :  { %v177_v42 = vmul.f32 %v154_v40, %v848_v30  ;;  %v181_v43 = vmul.f32 %v162_v41, %v848_v30 }
  0xf4   :  { %v975_v45 = vadd.f32 1e-05, %v177_v42  ;;  %v977_v49 = vadd.f32 1e-05, %v181_v43 }
  0xf6   :  { %683 = vrsqrt.f32 %v975_v45  ;;  %vm287_vm2 = vweird.f32 %v975_v45  ;;  %vm327_vm5 = vweird.f32 %v977_v49 }
  0xf7   :  { %685 = vrsqrt.f32 %v977_v49 }
  0xf9   :  { %v164_v51 = vpop.xlane.xlu1 %163  ;;  %v156_v52 = vpop.xlane.xlu2 %155 }
  0xfa   :  { %v182_v53 = vmul.f32 %v164_v51, %v848_v30  ;;  %v140_v54 = vpop.xlane.xlu0 %139  ;;  %v178_v56 = vmul.f32 %v156_v52, %v848_v30 }
  0xfb   :  { %v170_v57 = vmul.f32 %v140_v54, %v848_v30 }
  0xfc   :  { %v987_v58 = vpop.eup %683  ;;  %v989_v60 = vadd.f32 1e-05, %v182_v53  ;;  %v991_v62 = vadd.f32 1e-05, %v178_v56 }
  0xfd   :  { %v282_v63 = vmul.f32 %v987_v58, %v975_v45  ;;  %v995_v0 = vadd.f32 1e-05, %v170_v57  ;;  %v997_v2 = vpop.eup %685  ;;  %vm288_vm1 = vweird.f32 %v987_v58 }
  0xfe   :  { %687 = vrsqrt.f32 %v989_v60  ;;  %v322_v4 = vmul.f32 %v997_v2, %v977_v49  ;;  %vm328_vm3 = vweird.f32 %v997_v2  ;;  %vm1046_vm4 = vmor %vm287_vm2, %vm288_vm1  ;;  %vm337_vm7 = vweird.f32 %v989_v60 }
  0xff   :  { %v283_v3 = vmul.f32 %v987_v58, %v282_v63  ;;  %689 = vrsqrt.f32 %v995_v0  ;;  %vm297_vm8 = vweird.f32 %v991_v62  ;;  %vm217_vm11 = vweird.f32 %v995_v0  ;;  %vm1115_vm13 = vmor %vm327_vm5, %vm328_vm3 }
 0x100   :  { %691 = vrsqrt.f32 %v991_v62  ;;  %v323_v17 = vmul.f32 %v997_v2, %v322_v4 }
 0x101   :  { %v146_v5 = vpop.xlane.xlu1 %145  ;;  %v138_v6 = vpop.xlane.xlu2 %137  ;;  %v284_v8 = vmul.f32 0.5, %v283_v3 }
 0x102   :  { %v173_v11 = vmul.f32 %v146_v5, %v848_v30  ;;  %v158_v12 = vpop.xlane.xlu0 %157  ;;  %v169_v13 = vmul.f32 %v138_v6, %v848_v30  ;;  %v324_v35 = vmul.f32 0.5, %v323_v17 }
 0x103   :  { %v179_v15 = vmul.f32 %v158_v12, %v848_v30  ;;  %v285_v31 = vsub.f32 1.5, %v284_v8 }
 0x104   :  { %v1008_v24 = vpop.eup %687  ;;  %v1010_v25 = vadd.f32 1e-05, %v173_v11  ;;  %v1017_v29 = vadd.f32 1e-05, %v169_v13  ;;  %v325_v53 = vsub.f32 1.5, %v324_v35 }
 0x105   :  { %v1012_v26 = vpop.eup %689  ;;  %v1015_v28 = vadd.f32 1e-05, %v179_v15  ;;  %v332_v32 = vmul.f32 %v1008_v24, %v989_v60  ;;  %v286_v23 = vmul.f32 %v987_v58, %v285_v31  ;;  %vm338_vm10 = vweird.f32 %v1008_v24 }
 0x106   :  { %v1019_v16 = vpop.eup %691  ;;  %693 = vrsqrt.f32 %v1010_v25  ;;  %v212_v34 = vmul.f32 %v1012_v26, %v995_v0  ;;  %vm218_vm12 = vweird.f32 %v1012_v26  ;;  %vm207_vm15 = vweird.f32 %v1017_v29  ;;  %vm1149_vm0 = vmor %vm337_vm7, %vm338_vm10 }
 0x107   :  { %v292_v33 = vmul.f32 %v1019_v16, %v991_v62  ;;  %695 = vrsqrt.f32 %v1015_v28  ;;  %v333_v38 = vmul.f32 %v1008_v24, %v332_v32  ;;  %v290_v4 = vsel %vm1046_vm4, %v987_v58, %v286_v23  ;;  %v1081_v32 = vld [vmem:[%s1365_s1] ss:$0 sm:$0xff] }
 0x108   :  { %697 = vrsqrt.f32 %v1017_v29  ;;  %v213_v50 = vmul.f32 %v1012_v26, %v212_v34  ;;  %vm298_vm6 = vweird.f32 %v1019_v16  ;;  %v369_v31 = vmul.f32 %v290_v4, %v854_v37 }
 0x109   :  { %v293_v18 = vmul.f32 %v1019_v16, %v292_v33  ;;  %v160_v19 = vpop.xlane.xlu1 %159  ;;  %v148_v21 = vpop.xlane.xlu2 %147  ;;  %v334_v63 = vmul.f32 0.5, %v333_v38  ;;  %vm1085_vm9 = vmor %vm297_vm8, %vm298_vm6  ;;  %v326_v37 = vmul.f32 %v997_v2, %v325_v53  ;;  %vm307_vm1 = vweird.f32 %v1015_v28 }
 0x10a   :  { %v180_v39 = vmul.f32 %v160_v19, %v848_v30  ;;  %v168_v40 = vpop.xlane.xlu0 %167  ;;  %v174_v41 = vmul.f32 %v148_v21, %v848_v30  ;;  %v214_v12 = vmul.f32 0.5, %v213_v50  ;;  %vm247_vm4 = vweird.f32 %v1010_v25 }
 0x10b   :  { %v294_v42 = vmul.f32 0.5, %v293_v18  ;;  %v184_v43 = vmul.f32 %v168_v40, %v848_v30  ;;  %v335_v33 = vsub.f32 1.5, %v334_v63 }
 0x10c   :  { %v1037_v44 = vpop.eup %693  ;;  %v1042_v51 = vadd.f32 1e-05, %v180_v39  ;;  %v1053_v45 = vadd.f32 1e-05, %v174_v41  ;;  %v215_v40 = vsub.f32 1.5, %v214_v12 }
 0x10d   :  { %v295_v54 = vsub.f32 1.5, %v294_v42  ;;  %v242_v56 = vmul.f32 %v1037_v44, %v1010_v25  ;;  %v1055_v57 = vpop.eup %695  ;;  %v1058_v3 = vadd.f32 1e-05, %v184_v43  ;;  %vm248_vm14 = vweird.f32 %v1037_v44 }
 0x10e   :  { %699 = vrsqrt.f32 %v1042_v51  ;;  %v1063_v5 = vpop.eup %697  ;;  %v302_v11 = vmul.f32 %v1055_v57, %v1015_v28  ;;  %vm308_vm2 = vweird.f32 %v1055_v57  ;;  %vm257_vm6 = vweird.f32 %v1053_v45 }
 0x10f   :  { %v296_v6 = vmul.f32 %v1019_v16, %v295_v54  ;;  %v243_v8 = vmul.f32 %v1037_v44, %v242_v56  ;;  %v202_v13 = vmul.f32 %v1063_v5, %v1017_v29  ;;  %701 = vrsqrt.f32 %v1058_v3 }
 0x110   :  { %v303_v58 = vmul.f32 %v1055_v57, %v302_v11  ;;  %703 = vrsqrt.f32 %v1053_v45  ;;  %v336_v56 = vmul.f32 %v1008_v24, %v335_v33  ;;  %vm208_vm3 = vweird.f32 %v1063_v5 }
 0x111   :  { %v142_v15 = vpop.xlane.xlu1 %141  ;;  %v166_v17 = vpop.xlane.xlu2 %165  ;;  %v203_v62 = vmul.f32 %v1063_v5, %v202_v13  ;;  %v244_v21 = vmul.f32 0.5, %v243_v8  ;;  %v300_v38 = vsel %vm1085_vm9, %v1019_v16, %v296_v6  ;;  %v389_v16 = vmul.f32 %v1081_v32, %v369_v31  ;;  %v1127_v6 = vld [vmem:[%s1366_s2] ss:$0 sm:$0xff]  ;;  %vm1198_vm9 = vmor %vm217_vm11, %vm218_vm12  ;;  %s742_s2 = smov [#allocation2]  }
 0x112   :  { %v171_v35 = vmul.f32 %v142_v15, %v848_v30  ;;  %v150_v18 = vpop.xlane.xlu0 %149  ;;  %v183_v19 = vmul.f32 %v166_v17, %v848_v30  ;;  %v304_v41 = vmul.f32 0.5, %v303_v58  ;;  %v370_v4 = vmul.f32 %v300_v38, %v865_v47  ;;  %vm1212_vm11 = vmor %vm207_vm15, %vm208_vm3  ;;  %s558_s22 = sshll.u32 %s742_s2, 4  ;;  %s559_s22 = int_to_ptr.vmem [resolvable:$true] %s558_s22 }
 0x113   :  { %v175_v23 = vmul.f32 %v150_v18, %v848_v30  ;;  %v204_v43 = vmul.f32 0.5, %v203_v62  ;;  %v245_v49 = vsub.f32 1.5, %v244_v21  ;;  %v330_v13 = vsel %vm1115_vm13, %v997_v2, %v326_v37  ;;  %vm1234_vm12 = vmor %vm247_vm4, %vm248_vm14 }
 0x114   :  { %v1097_v39 = vpop.eup %699  ;;  %v1100_v42 = vadd.f32 1e-05, %v171_v35  ;;  %v1106_v52 = vadd.f32 1e-05, %v183_v19  ;;  %v1138_v58 = vmul.f32 %v1012_v26, %v215_v40  ;;  %v305_v47 = vsub.f32 1.5, %v304_v41  ;;  %vm1246_vm3 = vmor %vm307_vm1, %vm308_vm2 }
 0x115   :  { %v312_v50 = vmul.f32 %v1097_v39, %v1042_v51  ;;  %v1109_v53 = vpop.eup %701  ;;  %v1121_v63 = vadd.f32 1e-05, %v175_v23  ;;  %v205_v2 = vsub.f32 1.5, %v204_v43  ;;  %v390_v60 = vmul.f32 %v1081_v32, %v370_v4 }
 0x116   :  { %705 = vrsqrt.f32 %v1100_v42  ;;  %v1129_v8 = vpop.eup %703  ;;  %v352_v12 = vmul.f32 %v1109_v53, %v1058_v3  ;;  %v409_v34 = vadd.f32 %v1127_v6, %v389_v16  ;;  %v340_v62 = vsel %vm1149_vm0, %v1008_v24, %v336_v56 }
 0x117   :  { %v313_v11 = vmul.f32 %v1097_v39, %v312_v50  ;;  %v252_v15 = vmul.f32 %v1129_v8, %v1053_v45  ;;  %707 = vrsqrt.f32 %v1121_v63  ;;  %v1166_v19 = vmul.f32 %v1037_v44, %v245_v49 }
 0x118   :  { %v353_v31 = vmul.f32 %v1109_v53, %v352_v12  ;;  %709 = vrsqrt.f32 %v1106_v52  ;;  %v373_v21 = vmul.f32 %v330_v13, %v852_v36  ;;  %v374_v23 = vmul.f32 %v340_v62, %v863_v46 }
 0x119   :  { %v253_v33 = vmul.f32 %v1129_v8, %v252_v15  ;;  %v152_v35 = vpop.xlane.xlu1 %151  ;;  %v144_v18 = vpop.xlane.xlu2 %143  ;;  %v314_v37 = vmul.f32 0.5, %v313_v11  ;;  %v1173_v40 = vmul.f32 %v1055_v57, %v305_v47  ;;  %vm318_vm5 = vweird.f32 %v1097_v39 }
 0x11a   :  { %v354_v41 = vmul.f32 0.5, %v353_v31  ;;  %v410_v24 = vadd.f32 %v1127_v6, %v390_v60  ;;  %v206_v50 = vmul.f32 %v1063_v5, %v205_v2  ;;  %v176_v46 = vmul.f32 %v152_v35, %v848_v30 }
 0x11b   :  { %v254_v43 = vmul.f32 0.5, %v253_v33  ;;  %v172_v16 = vmul.f32 %v144_v18, %v848_v30  ;;  %vm317_vm7 = vweird.f32 %v1042_v51  ;;  %v393_v49 = vmul.f32 %v1081_v32, %v373_v21 }
 0x11c   :  { %v1170_v38 = vpop.eup %705  ;;  %v421_v4 = vpack.c.bf16 %v410_v24, %v409_v34  ;;  %v394_v11 = vmul.f32 %v1081_v32, %v374_v23  ;;  %v315_v13 = vsub.f32 1.5, %v314_v37  ;;  %vm258_vm8 = vweird.f32 %v1129_v8  ;;  %vm319_vm2 = vmor %vm317_vm7, %vm318_vm5 }
 0x11d   :  { %v222_v36 = vmul.f32 %v1170_v38, %v1100_v42  ;;  %v1183_v54 = vpop.eup %707  ;;  %v255_v56 = vsub.f32 1.5, %v254_v43  ;;  %v355_v17 = vsub.f32 1.5, %v354_v41  ;;  %vm357_vm10 = vweird.f32 %v1058_v3 }
 0x11e   :  { %v1188_v12 = vpop.eup %709  ;;  %v262_v30 = vmul.f32 %v1183_v54, %v1121_v63  ;;  %vm358_vm13 = vweird.f32 %v1109_v53  ;;  %517 = vmatmul.bf16.vlgmr.msra.gmra.mxu2 %v421_v4  ;;  %v413_v33 = vadd.f32 %v1127_v6, %v393_v49  ;;  %v414_v62 = vadd.f32 %v1127_v6, %v394_v11 }
 0x11f   :  { %v223_v47 = vmul.f32 %v1170_v38, %v222_v36  ;;  %v256_v2 = vmul.f32 %v1129_v8, %v255_v56  ;;  %v342_v31 = vmul.f32 %v1188_v12, %v1106_v52  ;;  %v1218_v35 = vadd.f32 1e-05, %v176_v46 }
 0x120   :  { %v263_v34 = vmul.f32 %v1183_v54, %v262_v30  ;;  %v1221_v37 = vadd.f32 1e-05, %v172_v16  ;;  %v210_v21 = vsel %vm1212_vm11, %v1063_v5, %v206_v50  ;;  %v220_v29 = vsel %vm1198_vm9, %v1012_v26, %v1138_v58  ;;  %vm1258_vm9 = vmor %vm257_vm6, %vm258_vm8 }
 0x121   :  { %v224_v60 = vmul.f32 0.5, %v223_v47  ;;  %v343_v18 = vmul.f32 %v1188_v12, %v342_v31  ;;  %v316_v41 = vmul.f32 %v1097_v39, %v315_v13  ;;  %vm267_vm15 = vweird.f32 %v1121_v63  ;;  %vm1299_vm6 = vmor %vm357_vm10, %vm358_vm13 }
 0x122   :  { %v264_v43 = vmul.f32 0.5, %v263_v34  ;;  %vm347_vm0 = vweird.f32 %v1106_v52  ;;  %v423_v5 = vpack.c.bf16 %v414_v62, %v413_v33  ;;  %711 = vrsqrt.f32 %v1218_v35 }
 0x123   :  { %v356_v26 = vmul.f32 %v1109_v53, %v355_v17  ;;  %vm227_vm14 = vweird.f32 %v1100_v42  ;;  %vm228_vm4 = vweird.f32 %v1170_v38  ;;  %v344_v58 = vmul.f32 0.5, %v343_v18 }
 0x124   :  { %713 = vrsqrt.f32 %v1221_v37  ;;  %v225_v28 = vsub.f32 1.5, %v224_v60  ;;  %vm348_vm1 = vweird.f32 %v1188_v12  ;;  %527 = vmatmul.bf16.vlgmr.msra.gmra.mxu3 %v423_v5  ;;  %v361_v50 = vmul.f32 %v210_v21, %v878_v55  ;;  %vm1317_vm8 = vmor %vm227_vm14, %vm228_vm4 }
 0x125   :  { %v362_v36 = vmul.f32 %v220_v29, %v867_v48  ;;  %v345_v46 = vsub.f32 1.5, %v344_v58  ;;  %v250_v16 = vsel %vm1234_vm12, %v1037_v44, %v1166_v19  ;;  %v260_v45 = vsel %vm1258_vm9, %v1129_v8, %v256_v2  ;;  %vm349_vm7 = vmor %vm347_vm0, %vm348_vm1 }
 0x126   :  { %v310_v56 = vsel %vm1246_vm3, %v1055_v57, %v1173_v40  ;;  %v265_v48 = vsub.f32 1.5, %v264_v43  ;;  %v381_v55 = vmul.f32 %v1081_v32, %v361_v50  ;;  %v365_v44 = vmul.f32 %v250_v16, %v884_v59 }
 0x127   :  { %v382_v4 = vmul.f32 %v1081_v32, %v362_v36  ;;  %v346_v19 = vmul.f32 %v1188_v12, %v345_v46  ;;  %v366_v8 = vmul.f32 %v260_v45, %v899_v1  ;;  %v320_v49 = vsel %vm319_vm2, %v1097_v39, %v316_v41 }
 0x128   :  { %v371_v57 = vmul.f32 %v310_v56, %v889_v61  ;;  %v712_v40 = vpop.eup %711  ;;  %v401_v11 = vadd.f32 %v1127_v6, %v381_v55  ;;  %v385_v13 = vmul.f32 %v1081_v32, %v365_v44  ;;  %v372_v47 = vmul.f32 %v320_v49, %v905_v7 }
 0x129   :  { %v402_v51 = vadd.f32 %v1127_v6, %v382_v4  ;;  %vm268_vm5 = vweird.f32 %v1183_v54  ;;  %v272_v59 = vmul.f32 %v712_v40, %v1218_v35  ;;  %v386_v1 = vmul.f32 %v1081_v32, %v366_v8 }
 0x12a   :  { %v714_v30 = vpop.eup %713  ;;  %v391_v39 = vmul.f32 %v1081_v32, %v371_v57  ;;  %v226_v15 = vmul.f32 %v1170_v38, %v225_v28  ;;  %v266_v7 = vmul.f32 %v1183_v54, %v265_v48  ;;  %v405_v33 = vadd.f32 %v1127_v6, %v385_v13  ;;  %vm1330_vm10 = vmor %vm267_vm15, %vm268_vm5 }
 0x12b   :  { %v232_v17 = vmul.f32 %v714_v30, %v1221_v37  ;;  %v417_v2 = vpack.c.bf16 %v402_v51, %v401_v11  ;;  %v273_v31 = vmul.f32 %v712_v40, %v272_v59  ;;  %v406_v3 = vadd.f32 %v1127_v6, %v386_v1 }
 0x12c   :  { %v392_v0 = vmul.f32 %v1081_v32, %v372_v47  ;;  %v411_v52 = vadd.f32 %v1127_v6, %v391_v39  ;;  %v350_v62 = vsel %vm349_vm7, %v1188_v12, %v346_v19  ;;  %v360_v18 = vsel %vm1299_vm6, %v1109_v53, %v356_v26 }
 0x12d   :  { %v233_v34 = vmul.f32 %v714_v30, %v232_v17  ;;  %497 = vmatmul.bf16.vlgmr.msra.gmra.mxu0 %v417_v2  ;;  %v274_v21 = vmul.f32 0.5, %v273_v31  ;;  %v419_v29 = vpack.c.bf16 %v406_v3, %v405_v33  ;;  %v375_v41 = vmul.f32 %v350_v62, %v920_v10 }
 0x12e   :  { %v412_v23 = vadd.f32 %v1127_v6, %v392_v0  ;;  %v376_v12 = vmul.f32 %v360_v18, %v912_v9  ;;  %v230_v53 = vsel %vm1317_vm8, %v1170_v38, %v226_v15  ;;  %v270_v63 = vsel %vm1330_vm10, %v1183_v54, %v266_v7 }
 0x12f   :  { %v234_v43 = vmul.f32 0.5, %v233_v34  ;;  %v275_v5 = vsub.f32 1.5, %v274_v21  ;;  %vm278_vm13 = vweird.f32 %v712_v40  ;;  %507 = vmatmul.bf16.vlgmr.msra.gmra.mxu1 %v419_v29  ;;  %v395_v26 = vmul.f32 %v1081_v32, %v375_v41 }
 0x130   :  { %v422_v25 = vpack.c.bf16 %v412_v23, %v411_v52  ;;  %vm277_vm11 = vweird.f32 %v1218_v35  ;;  %vm238_vm12 = vweird.f32 %v714_v30  ;;  %v396_v9 = vmul.f32 %v1081_v32, %v376_v12 }
 0x131   :  { %v235_v10 = vsub.f32 1.5, %v234_v43  ;;  %v276_v58 = vmul.f32 %v712_v40, %v275_v5  ;;  %v415_v38 = vadd.f32 %v1127_v6, %v395_v26  ;;  %v363_v24 = vmul.f32 %v230_v53, %v926_v27  ;;  %vm279_vm15 = vmor %vm277_vm11, %vm278_vm13 }
 0x132   :  { %522 = vmatmul.bf16.gmra.mxu2 %v422_v25  ;;  %v367_v54 = vmul.f32 %v270_v63, %v933_v14  ;;  %vm237_vm0 = vweird.f32 %v1221_v37  ;;  %v416_v50 = vadd.f32 %v1127_v6, %v396_v9 }
 0x133   :  { %v236_v28 = vmul.f32 %v714_v30, %v235_v10  ;;  %vm239_vm3 = vmor %vm237_vm0, %vm238_vm12  ;;  %v280_v35 = vsel %vm279_vm15, %v712_v40, %v276_v58  ;;  %v383_v56 = vmul.f32 %v1081_v32, %v363_v24 }
 0x134   :  { %v424_v36 = vpack.c.bf16 %v416_v50, %v415_v38  ;;  %v368_v16 = vmul.f32 %v280_v35, %v946_v22  ;;  %v387_v27 = vmul.f32 %v1081_v32, %v367_v54 }
 0x135   :  { %v240_v46 = vsel %vm239_vm3, %v714_v30, %v236_v28  ;;  %v403_v55 = vadd.f32 %v1127_v6, %v383_v56 }
 0x136   :  { %v364_v45 = vmul.f32 %v240_v46, %v941_v20  ;;  %532 = vmatmul.bf16.gmra.mxu3 %v424_v36  ;;  %v388_v14 = vmul.f32 %v1081_v32, %v368_v16  ;;  %v407_v44 = vadd.f32 %v1127_v6, %v387_v27 }
 0x138   :  { %v384_v48 = vmul.f32 %v1081_v32, %v364_v45  ;;  %v408_v37 = vadd.f32 %v1127_v6, %v388_v14 }
 0x13a   :  { %v404_v4 = vadd.f32 %v1127_v6, %v384_v48  ;;  %v420_v19 = vpack.c.bf16 %v408_v37, %v407_v44 }
 0x13c   :  { %v418_v22 = vpack.c.bf16 %v404_v4, %v403_v55 }
 0x13e   :  { %502 = vmatmul.bf16.gmra.mxu0 %v418_v22 }
 0x13f   :  { %512 = vmatmul.bf16.gmra.mxu1 %v420_v19 }
 0x1a1   :  { %v518_v20 = vpop.f32.mrf.mxu2 }
 0x1a2   :  { %546 = vst [vmem:[#allocation2 + $0x40] sm:$0xff] %v518_v20 }
 0x1a7   :  { %v528_v8 = vpop.f32.mrf.mxu3 }
 0x1a8   :  { %550 = vst [vmem:[#allocation2 + $0x60] sm:$0xff] %v528_v8 }
 0x1a9   :  { %v520_v57 = vpop.f32.mrf.mxu2 }
 0x1aa   :  { %v498_v49 = vpop.f32.mrf.mxu0  ;;  %547 = vst [vmem:[#allocation2 + $0x48] sm:$0xff] %v520_v57 }
 0x1ab   :  { %538 = vst [vmem:[#allocation2] sm:$0xff] %v498_v49 }
 0x1ac   :  { %v508_v32 = vpop.f32.mrf.mxu1 }
 0x1ad   :  { %542 = vst [vmem:[#allocation2 + $0x20] sm:$0xff] %v508_v32 }
 0x1af   :  { %v530_v40 = vpop.f32.mrf.mxu3 }
 0x1b0   :  { %551 = vst [vmem:[#allocation2 + $0x68] sm:$0xff] %v530_v40 }
 0x1b2   :  { %v500_v11 = vpop.f32.mrf.mxu0 }
 0x1b3   :  { %539 = vst [vmem:[#allocation2 + $0x8] sm:$0xff] %v500_v11 }
 0x1b4   :  { %v510_v6 = vpop.f32.mrf.mxu1 }
 0x1b5   :  { %v523_v51 = vpop.f32.mrf.mxu2  ;;  %543 = vst [vmem:[#allocation2 + $0x28] sm:$0xff] %v510_v6 }
 0x1b6   :  { %548 = vst [vmem:[#allocation2 + $0x50] sm:$0xff] %v523_v51 }
 0x1b9   :  { %v533_v13 = vpop.f32.mrf.mxu3 }
 0x1ba   :  { %552 = vst [vmem:[#allocation2 + $0x70] sm:$0xff] %v533_v13 }
 0x1bb   :  { %v503_v47 = vpop.f32.mrf.mxu0 }
 0x1bc   :  { %540 = vst [vmem:[#allocation2 + $0x10] sm:$0xff] %v503_v47  ;;  %v513_v59 = vpop.f32.mrf.mxu1 }
 0x1bd   :  { %v525_v30 = vpop.f32.mrf.mxu2  ;;  %544 = vst [vmem:[#allocation2 + $0x30] sm:$0xff] %v513_v59 }
 0x1be   :  { %549 = vst [vmem:[#allocation2 + $0x58] sm:$0xff] %v525_v30 }
 0x1c1   :  { %v535_v1 = vpop.f32.mrf.mxu3 }
 0x1c2   :  { %553 = vst [vmem:[#allocation2 + $0x78] sm:$0xff] %v535_v1 }
 0x1c3   :  { %v505_v39 = vpop.f32.mrf.mxu0 }
 0x1c4   :  { %541 = vst [vmem:[#allocation2 + $0x18] sm:$0xff] %v505_v39  ;;  %v515_v61 = vpop.f32.mrf.mxu1 }
 0x1c5   :  { %545 = vst [vmem:[#allocation2 + $0x38] sm:$0xff] %v515_v61 }
 0x1c6   :  { %566 = dma.vmem_to_hbm [thread:$0]  %s559_s22, 2048, %s561_s25, [#allocation3], %s743_s26, %s743_s26, %s744_s27  }
 0x1c7   :  { %739 = dma.done.wait [#allocation3], 2048  }
 0x1c8   :  { %740 = vsyncadd [#allocation3], 4294965248 }
 0x1c9   :  { %571 = vsyncpa [#allocation3], 1 }

</bundles_post_ra>
